<compile_context>
chip_gen: v7x
topology: tpu7x:2x2x1
jax: 0.10.0
libtpu: 0.0.40
codegen_flags: <defaults>
</compile_context>

<pallas_src>
import functools

import jax
import jax.numpy as jnp
from jax import lax
from jax.experimental import pallas as pl
from jax.experimental.pallas import tpu as pltpu

LANE = 128
MAX_BLOCK_ROWS = 2048   # (2048, 128) f32 = 1 MiB/block; x2 inputs x2 bufs = 4 MiB
NUM_SHARDS = 2          # leading "parallel" grid axis (exploited by v7x megacore)


def _round_up(x, m):
    return ((x + m - 1) // m) * m


def _ftl_partials_kernel(x_ref, t_ref, o_ref, pt_acc, p_acc, t_acc,
                         *, block_rows, steps_per_shard, n_valid, needs_mask):
    s = pl.program_id(0)   # shard (parallel axis)
    j = pl.program_id(1)   # step within shard (reduction axis)

    @pl.when(j == 0)
    def _():
        pt_acc[...] = jnp.zeros_like(pt_acc)
        p_acc[...] = jnp.zeros_like(p_acc)
        t_acc[...] = jnp.zeros_like(t_acc)

    x = x_ref[...].astype(jnp.float32)
    t = t_ref[...].astype(jnp.float32)
    p = jax.nn.sigmoid(x)

    if needs_mask:
        # Global flat element index of every lane of this block; zero anything
        # past the true element count.  Covers lane/row padding, the partial
        # last block, and any clamped overhang blocks from the shard split.
        block_idx = s * steps_per_shard + j
        rows = lax.broadcasted_iota(jnp.int32, (block_rows, LANE), 0)
        cols = lax.broadcasted_iota(jnp.int32, (block_rows, LANE), 1)
        flat = (block_idx * block_rows + rows) * LANE + cols
        valid = flat < n_valid
        p = jnp.where(valid, p, 0.0)
        t = jnp.where(valid, t, 0.0)

    # Fold the block's rows into a single (8, 128) vreg per running sum (pure
    # VPU adds); the cross-lane reduction is deferred to the wrapper.
    p3 = p.reshape(-1, 8, LANE)
    t3 = t.reshape(-1, 8, LANE)
    pt_acc[...] += jnp.sum(p3 * t3, axis=0)
    p_acc[...] += jnp.sum(p3, axis=0)
    t_acc[...] += jnp.sum(t3, axis=0)

    # Flush this shard's partial sums on its last step.
    @pl.when(j == pl.num_programs(1) - 1)
    def _():
        o_ref[0, 0, :, :] = pt_acc[...]
        o_ref[0, 1, :, :] = p_acc[...]
        o_ref[0, 2, :, :] = t_acc[...]


def focal_tversky_loss(inp, target, alpha, beta, gamma, reduction="mean",
                       *, max_block_rows=MAX_BLOCK_ROWS):
    assert reduction in ("mean", "sum")   # both are identity on a scalar loss
    eps = 1e-6

    n = inp.size
    xf = jnp.ravel(inp)        # keep native dtype; upcast happens in-kernel
    tf = jnp.ravel(target)

    n_rows = _round_up(pl.cdiv(n, LANE), 8)   # rows of 128 lanes, sublane-aligned
    n_pad = n_rows * LANE
    if n_pad != n:                            # only copies when truly ragged
        xf = jnp.pad(xf, (0, n_pad - n))
        tf = jnp.pad(tf, (0, n_pad - n))
    x2d = xf.reshape(n_rows, LANE)
    t2d = tf.reshape(n_rows, LANE)

    block_rows = min(max_block_rows, n_rows)          # both multiples of 8
    blocks_total = pl.cdiv(n_rows, block_rows)
    num_shards = min(NUM_SHARDS, blocks_total)
    steps = pl.cdiv(blocks_total, num_shards)
    needs_mask = (num_shards * steps * block_rows * LANE) != n

    kernel = functools.partial(
        _ftl_partials_kernel,
        block_rows=block_rows, steps_per_shard=steps,
        n_valid=n, needs_mask=needs_mask)

    partials = pl.pallas_call(
        kernel,
        out_shape=jax.ShapeDtypeStruct((num_shards, 3, 8, LANE), jnp.float32),
        grid_spec=pltpu.PrefetchScalarGridSpec(
            num_scalar_prefetch=0,
            grid=(num_shards, steps),
            in_specs=[
                pl.BlockSpec((block_rows, LANE), lambda s, j: (s * steps + j, 0)),
                pl.BlockSpec((block_rows, LANE), lambda s, j: (s * steps + j, 0)),
            ],
            out_specs=pl.BlockSpec((1, 3, 8, LANE), lambda s, j: (s, 0, 0, 0)),
            scratch_shapes=[
                pltpu.VMEM((8, LANE), jnp.float32),   # sum(p * t)
                pltpu.VMEM((8, LANE), jnp.float32),   # sum(p)
                pltpu.VMEM((8, LANE), jnp.float32),   # sum(t)
            ],
        ),
        compiler_params=pltpu.CompilerParams(
            dimension_semantics=("parallel", "arbitrary")),
    )(x2d, t2d)

    # Combine the per-shard lane-parallel partials (one cross-lane reduce) and
    # apply the scalar Tversky finalize.
    sums = jnp.sum(partials, axis=(0, 2, 3))   # (3,): [sum(p*t), sum(p), sum(t)]
    inter, sum_p, sum_t = sums[0], sums[1], sums[2]
    fps = sum_p - inter
    fns = sum_t - inter
    tversky = inter / (inter + alpha * fps + beta * fns + eps)
    loss = (1.0 - tversky) ** gamma
    return loss                                # 'mean'/'sum' of a scalar == scalar


def focal_tversky_loss_ref(inp, target, alpha, beta, gamma):
    p = jax.nn.sigmoid(inp.astype(jnp.float32)).reshape(-1)
    t = target.astype(jnp.float32).reshape(-1)
    inter = jnp.sum(p * t)
    fps = jnp.sum(p * (1.0 - t))
    fns = jnp.sum((1.0 - p) * t)
    tv = inter / (inter + alpha * fps + beta * fns + 1e-6)
    return (1.0 - tv) ** gamma


if __name__ == "__main__":
    key = jax.random.PRNGKey(0)
    k1, k2, k3, k4 = jax.random.split(key, 4)

    alpha, beta, gamma = 0.7, 0.3, 0.75

    # Main check: NCHW input matching the PyTorch convention.
    B, C, H, W = 2, 4, 16, 16
    logits = jax.random.normal(k1, (B, C, H, W), dtype=jnp.float32)
    targets = (jax.random.uniform(k2, (B, C, H, W)) > 0.5).astype(jnp.float32)

    loss = focal_tversky_loss(logits, targets, alpha, beta, gamma,
                              reduction="mean")
    loss = jax.block_until_ready(loss)
    ref = focal_tversky_loss_ref(logits, targets, alpha, beta, gamma)
    assert jnp.allclose(loss, ref, atol=1e-5, rtol=1e-5), (loss, ref)

    # Secondary check: ragged element count + tiny blocks to exercise the
    # multi-block, sharded, masked code path.
    shp = (3, 5, 13, 17)
    logits2 = jax.random.normal(k3, shp, dtype=jnp.float32)
    targets2 = (jax.random.uniform(k4, shp) > 0.5).astype(jnp.float32)
    loss2 = focal_tversky_loss(logits2, targets2, alpha, beta, gamma,
                               reduction="sum", max_block_rows=8)
    loss2 = jax.block_until_ready(loss2)
    ref2 = focal_tversky_loss_ref(logits2, targets2, alpha, beta, gamma)
    assert jnp.allclose(loss2, ref2, atol=1e-5, rtol=1e-5), (loss2, ref2)

    print("KERNEL_OK")
</pallas_src>

<mosaic_0001>
module attributes {stable_mosaic.version = 11 : i64} {
  func.func @_ftl_partials_kernel(%arg0: i32, %arg1: i32, %arg2: memref<16x128xf32, #tpu.memory_space<vmem>>, %arg3: memref<16x128xf32, #tpu.memory_space<vmem>>, %arg4: memref<1x3x8x128xf32, #tpu.memory_space<vmem>>, %arg5: memref<8x128xf32, #tpu.memory_space<vmem>>, %arg6: memref<8x128xf32, #tpu.memory_space<vmem>>, %arg7: memref<8x128xf32, #tpu.memory_space<vmem>>) attributes {dimension_semantics = [#tpu.dimension_semantics<parallel>, #tpu.dimension_semantics<arbitrary>], iteration_bounds = array<i64: 1, 1>, scalar_prefetch = 0 : i64, scratch_operands = 3 : i64, tpu.core_type = #tpu.core_type<tc>, window_params = [{transform_indices = @transform_0, window_bounds = array<i64: 16, 128>}, {transform_indices = @transform_1, window_bounds = array<i64: 16, 128>}, {transform_indices = @transform_2, window_bounds = array<i64: 1, 3, 8, 128>}]} {
    %c0_i32 = arith.constant 0 : i32
    %0 = arith.cmpi eq, %arg1, %c0_i32 : i32
    %1 = arith.extui %0 : i1 to i32
    %c0_i32_0 = arith.constant 0 : i32
    %2 = arith.cmpi ne, %1, %c0_i32_0 : i32
    scf.if %2 {
      %cst_21 = arith.constant 0.000000e+00 : f32
      %28 = vector.broadcast %cst_21 : f32 to vector<8x128xf32>
      %c0_22 = arith.constant 0 : index
      %c0_23 = arith.constant 0 : index
      %29 = vector.load %arg5[%c0_22, %c0_23] : memref<8x128xf32, #tpu.memory_space<vmem>>, vector<8x128xf32>
      tpu.vector_store %arg5[%c0_22, %c0_23], %28 {strides = array<i32>} : memref<8x128xf32, #tpu.memory_space<vmem>>, vector<8x128xf32>,
      %cst_24 = arith.constant 0.000000e+00 : f32
      %30 = vector.broadcast %cst_24 : f32 to vector<8x128xf32>
      %c0_25 = arith.constant 0 : index
      %c0_26 = arith.constant 0 : index
      %31 = vector.load %arg6[%c0_25, %c0_26] : memref<8x128xf32, #tpu.memory_space<vmem>>, vector<8x128xf32>
      tpu.vector_store %arg6[%c0_25, %c0_26], %30 {strides = array<i32>} : memref<8x128xf32, #tpu.memory_space<vmem>>, vector<8x128xf32>,
      %cst_27 = arith.constant 0.000000e+00 : f32
      %32 = vector.broadcast %cst_27 : f32 to vector<8x128xf32>
      %c0_28 = arith.constant 0 : index
      %c0_29 = arith.constant 0 : index
      %33 = vector.load %arg7[%c0_28, %c0_29] : memref<8x128xf32, #tpu.memory_space<vmem>>, vector<8x128xf32>
      tpu.vector_store %arg7[%c0_28, %c0_29], %32 {strides = array<i32>} : memref<8x128xf32, #tpu.memory_space<vmem>>, vector<8x128xf32>,
    } else {
    }
    %c0 = arith.constant 0 : index
    %c0_1 = arith.constant 0 : index
    %3 = vector.load %arg2[%c0, %c0_1] : memref<16x128xf32, #tpu.memory_space<vmem>>, vector<16x128xf32>
    %c0_2 = arith.constant 0 : index
    %c0_3 = arith.constant 0 : index
    %4 = vector.load %arg3[%c0_2, %c0_3] : memref<16x128xf32, #tpu.memory_space<vmem>>, vector<16x128xf32>
    %5 = arith.negf %3 : vector<16x128xf32>
    %6 = math.exp %5 : vector<16x128xf32>
    %cst = arith.constant 1.000000e+00 : f32
    %7 = vector.broadcast %cst : f32 to vector<16x128xf32>
    %8 = arith.addf %7, %6 : vector<16x128xf32>
    %9 = arith.divf %7, %8 : vector<16x128xf32>
    %10 = vector.shape_cast %9 : vector<16x128xf32> to vector<2x8x128xf32>
    %11 = vector.shape_cast %4 : vector<16x128xf32> to vector<2x8x128xf32>
    %c0_4 = arith.constant 0 : index
    %c0_5 = arith.constant 0 : index
    %12 = vector.load %arg5[%c0_4, %c0_5] : memref<8x128xf32, #tpu.memory_space<vmem>>, vector<8x128xf32>
    %13 = arith.mulf %10, %11 : vector<2x8x128xf32>
    %cst_6 = arith.constant dense<0.000000e+00> : vector<8x128xf32>
    %14 = vector.multi_reduction <add>, %13, %cst_6 [0] : vector<2x8x128xf32> to vector<8x128xf32>
    %15 = arith.addf %12, %14 : vector<8x128xf32>
    %c0_7 = arith.constant 0 : index
    %c0_8 = arith.constant 0 : index
    %16 = vector.load %arg5[%c0_7, %c0_8] : memref<8x128xf32, #tpu.memory_space<vmem>>, vector<8x128xf32>
    tpu.vector_store %arg5[%c0_7, %c0_8], %15 {strides = array<i32>} : memref<8x128xf32, #tpu.memory_space<vmem>>, vector<8x128xf32>,
    %c0_9 = arith.constant 0 : index
    %c0_10 = arith.constant 0 : index
    %17 = vector.load %arg6[%c0_9, %c0_10] : memref<8x128xf32, #tpu.memory_space<vmem>>, vector<8x128xf32>
    %cst_11 = arith.constant dense<0.000000e+00> : vector<8x128xf32>
    %18 = vector.multi_reduction <add>, %10, %cst_11 [0] : vector<2x8x128xf32> to vector<8x128xf32>
    %19 = arith.addf %17, %18 : vector<8x128xf32>
    %c0_12 = arith.constant 0 : index
    %c0_13 = arith.constant 0 : index
    %20 = vector.load %arg6[%c0_12, %c0_13] : memref<8x128xf32, #tpu.memory_space<vmem>>, vector<8x128xf32>
    tpu.vector_store %arg6[%c0_12, %c0_13], %19 {strides = array<i32>} : memref<8x128xf32, #tpu.memory_space<vmem>>, vector<8x128xf32>,
    %c0_14 = arith.constant 0 : index
    %c0_15 = arith.constant 0 : index
    %21 = vector.load %arg7[%c0_14, %c0_15] : memref<8x128xf32, #tpu.memory_space<vmem>>, vector<8x128xf32>
    %cst_16 = arith.constant dense<0.000000e+00> : vector<8x128xf32>
    %22 = vector.multi_reduction <add>, %11, %cst_16 [0] : vector<2x8x128xf32> to vector<8x128xf32>
    %23 = arith.addf %21, %22 : vector<8x128xf32>
    %c0_17 = arith.constant 0 : index
    %c0_18 = arith.constant 0 : index
    %24 = vector.load %arg7[%c0_17, %c0_18] : memref<8x128xf32, #tpu.memory_space<vmem>>, vector<8x128xf32>
    tpu.vector_store %arg7[%c0_17, %c0_18], %23 {strides = array<i32>} : memref<8x128xf32, #tpu.memory_space<vmem>>, vector<8x128xf32>,
    %c0_i32_19 = arith.constant 0 : i32
    %25 = arith.cmpi eq, %arg1, %c0_i32_19 : i32
    %26 = arith.extui %25 : i1 to i32
    %c0_i32_20 = arith.constant 0 : i32
    %27 = arith.cmpi ne, %26, %c0_i32_20 : i32
    scf.if %27 {
      %c0_21 = arith.constant 0 : index
      %c0_22 = arith.constant 0 : index
      %28 = vector.load %arg5[%c0_21, %c0_22] : memref<8x128xf32, #tpu.memory_space<vmem>>, vector<8x128xf32>
      %c0_23 = arith.constant 0 : index
      %c0_24 = arith.constant 0 : index
      %c0_25 = arith.constant 0 : index
      %c0_26 = arith.constant 0 : index
      %29 = vector.load %arg4[%c0_23, %c0_24, %c0_25, %c0_26] : memref<1x3x8x128xf32, #tpu.memory_space<vmem>>, vector<1x1x8x128xf32>
      %30 = vector.shape_cast %29 : vector<1x1x8x128xf32> to vector<8x128xf32>
      %31 = vector.shape_cast %28 : vector<8x128xf32> to vector<1x1x8x128xf32>
      tpu.vector_store %arg4[%c0_23, %c0_24, %c0_25, %c0_26], %31 {strides = array<i32>} : memref<1x3x8x128xf32, #tpu.memory_space<vmem>>, vector<1x1x8x128xf32>,
      %c0_27 = arith.constant 0 : index
      %c0_28 = arith.constant 0 : index
      %32 = vector.load %arg6[%c0_27, %c0_28] : memref<8x128xf32, #tpu.memory_space<vmem>>, vector<8x128xf32>
      %c0_29 = arith.constant 0 : index
      %c1 = arith.constant 1 : index
      %c0_30 = arith.constant 0 : index
      %c0_31 = arith.constant 0 : index
      %33 = vector.load %arg4[%c0_29, %c1, %c0_30, %c0_31] : memref<1x3x8x128xf32, #tpu.memory_space<vmem>>, vector<1x1x8x128xf32>
      %34 = vector.shape_cast %33 : vector<1x1x8x128xf32> to vector<8x128xf32>
      %35 = vector.shape_cast %32 : vector<8x128xf32> to vector<1x1x8x128xf32>
      tpu.vector_store %arg4[%c0_29, %c1, %c0_30, %c0_31], %35 {strides = array<i32>} : memref<1x3x8x128xf32, #tpu.memory_space<vmem>>, vector<1x1x8x128xf32>,
      %c0_32 = arith.constant 0 : index
      %c0_33 = arith.constant 0 : index
      %36 = vector.load %arg7[%c0_32, %c0_33] : memref<8x128xf32, #tpu.memory_space<vmem>>, vector<8x128xf32>
      %c0_34 = arith.constant 0 : index
      %c2 = arith.constant 2 : index
      %c0_35 = arith.constant 0 : index
      %c0_36 = arith.constant 0 : index
      %37 = vector.load %arg4[%c0_34, %c2, %c0_35, %c0_36] : memref<1x3x8x128xf32, #tpu.memory_space<vmem>>, vector<1x1x8x128xf32>
      %38 = vector.shape_cast %37 : vector<1x1x8x128xf32> to vector<8x128xf32>
      %39 = vector.shape_cast %36 : vector<8x128xf32> to vector<1x1x8x128xf32>
      tpu.vector_store %arg4[%c0_34, %c2, %c0_35, %c0_36], %39 {strides = array<i32>} : memref<1x3x8x128xf32, #tpu.memory_space<vmem>>, vector<1x1x8x128xf32>,
    } else {
    }
    return
  }
  func.func @transform_0(%arg0: i32, %arg1: i32) -> (i32, i32) {
    %c1_i32 = arith.constant 1 : i32
    %0 = arith.muli %arg0, %c1_i32 : i32
    %1 = arith.addi %0, %arg1 : i32
    %c0_i32 = arith.constant 0 : i32
    %c0_i32_0 = arith.constant 0 : i32
    return %1, %c0_i32 : i32, i32
  }
  func.func @transform_1(%arg0: i32, %arg1: i32) -> (i32, i32) {
    %c1_i32 = arith.constant 1 : i32
    %0 = arith.muli %arg0, %c1_i32 : i32
    %1 = arith.addi %0, %arg1 : i32
    %c0_i32 = arith.constant 0 : i32
    %c0_i32_0 = arith.constant 0 : i32
    return %1, %c0_i32 : i32, i32
  }
  func.func @transform_2(%arg0: i32, %arg1: i32) -> (i32, i32, i32, i32) {
    %c0_i32 = arith.constant 0 : i32
    %c0_i32_0 = arith.constant 0 : i32
    %c0_i32_1 = arith.constant 0 : i32
    %c0_i32_2 = arith.constant 0 : i32
    return %arg0, %c0_i32, %c0_i32_0, %c0_i32_1 : i32, i32, i32, i32
  }
}

</mosaic_0001>

<bundles_post_ra>
// kernel: tpu_custom_call.1
= control target key start
LH: loop header
LB: loop body
LE: loop exit
PB: predicated region body
PF: predicated region fallthrough
CT: control target
= control target key end

     0   :  { %7 = vsyncpa [#allocation6], 0  ;;  %s270_s0 = inlined_call_operand.hbm [shape: f32[16,128], index: 0, kind: input, shape index: {}]   ;;  %s271_s1 = inlined_call_operand.hbm [shape: f32[16,128], index: 1, kind: input, shape index: {}]   ;;  %s272_s2 = inlined_call_operand.hbm [shape: f32[1,3,8,128], index: 2, kind: output, shape index: {}]  }
   0x1   :  { %8 = vsyncpa [#allocation9], 0 }
   0x2   :  { %9 = vsyncpa [#allocation7], 0  ;;  %s205_s9 = smov [#allocation5]   ;;  %s133_s13 = scalar_lea.hbm %s270_s0, 256 }
   0x3   :  { %s19_s10 = sshll.u32 %s205_s9, 4  ;;  %p134_p0 = scmp.ne.s32.totalorder %s270_s0, %s133_s13  ;;  %s20_s10 = int_to_ptr.vmem [resolvable:$true] %s19_s10 }
   0x4   :  { %p137_p1 = scmp.lt.u32.totalorder %s133_s13, %s270_s0 }
   0x6   :  { %p139_p2 = pnand %p137_p1, %p134_p0 }
   0x8   :  { %142 = shalt.err (!%p139_p2)
}
   0x9   :  { %s143_s18 = scalar_lea.vmem %s20_s10, 256  ;;  %p148_p4 = scmp.lt.s32.totalorder %s20_s10, %s20_s10 }
   0xa   :  { %p144_p3 = scmp.ne.s32.totalorder %s20_s10, %s143_s18  ;;  %p149_p5 = scmp.lt.s32.totalorder %s143_s18, %s143_s18 }
   0xc   :  { %p150_p6 = por %p149_p5, %p148_p4 }
   0xe   :  { %p151_p7 = pnand %p150_p6, %p144_p3 }
  0x10   :  { %154 = shalt.err (!%p151_p7)
}
  0x11   :  { %s206_s19 = smov 128   ;;  %s207_s20 = smov 8  }
  0x12   :  { %25 = dma.hbm_to_vmem [thread:$0]  %s270_s0, 256, %s20_s10, [#allocation6], %s206_s19, %s206_s19, %s207_s20  }
  0x13   :  { %s208_s23 = smov [#allocation8]   ;;  %s155_s27 = scalar_lea.hbm %s271_s1, 256 }
  0x14   :  { %s35_s24 = sshll.u32 %s208_s23, 4  ;;  %p156_p8 = scmp.ne.s32.totalorder %s271_s1, %s155_s27  ;;  %s36_s24 = int_to_ptr.vmem [resolvable:$true] %s35_s24 }
  0x15   :  { %p159_p9 = scmp.lt.u32.totalorder %s155_s27, %s271_s1 }
  0x17   :  { %p161_p10 = pnand %p159_p9, %p156_p8 }
  0x19   :  { %164 = shalt.err (!%p161_p10)
}
  0x1a   :  { %s165_s4 = scalar_lea.vmem %s36_s24, 256  ;;  %p170_p12 = scmp.lt.s32.totalorder %s36_s24, %s36_s24 }
  0x1b   :  { %p166_p11 = scmp.ne.s32.totalorder %s36_s24, %s165_s4  ;;  %p171_p13 = scmp.lt.s32.totalorder %s165_s4, %s165_s4 }
  0x1d   :  { %p172_p0 = por %p171_p13, %p170_p12 }
  0x1f   :  { %p173_p1 = pnand %p172_p0, %p166_p11 }
  0x21   :  { %176 = shalt.err (!%p173_p1)
}
  0x22   :  { %41 = dma.hbm_to_vmem [thread:$0]  %s271_s1, 256, %s36_s24, [#allocation9], %s206_s19, %s206_s19, %s207_s20  }
  0x23   :  { %199 = dma.done.wait [#allocation6], 256  }
  0x24   :  { %200 = vsyncadd [#allocation6], 4294967040 }
  0x25   :  { %201 = dma.done.wait [#allocation9], 256  }
  0x26   :  { %202 = vsyncadd [#allocation9], 4294967040  ;;  %v59_v0 = vld [vmem:[#allocation5] sm:$0xff]  ;;  %v60_v1 = vld [vmem:[#allocation5 + $0x8] sm:$0xff]  ;;  %s209_s1 = smov [#allocation10]  }
  0x27   :  { %v61_v2 = vld [vmem:[#allocation8] sm:$0xff]  ;;  %v62_v3 = vld [vmem:[#allocation8 + $0x8] sm:$0xff]  ;;  %v118_v4 = vmul.f32 -1.442695, %v59_v0  ;;  %v119_v5 = vmul.f32 -1.442695, %v60_v1 }
  0x28   :  { %v86_v6 = vadd.f32 %v62_v3, %v61_v2  ;;  %s105_s6 = sshll.u32 %s209_s1, 4  ;;  %s106_s6 = int_to_ptr.vmem [resolvable:$true] %s105_s6 }
  0x29   :  { %125 = vpow2.f32 %v118_v4  ;;  %s177_s7 = scalar_lea.vmem %s106_s6, 384  ;;  %p182_p3 = scmp.lt.s32.totalorder %s106_s6, %s106_s6 }
  0x2a   :  { %127 = vpow2.f32 %v119_v5  ;;  %99 = vst [vmem:[#allocation10 + $0x10] sm:$0xff] %v86_v6  ;;  %p178_p2 = scmp.ne.s32.totalorder %s106_s6, %s177_s7  ;;  %p183_p4 = scmp.lt.s32.totalorder %s177_s7, %s177_s7 }
  0x2c   :  { %p184_p5 = por %p183_p4, %p182_p3 }
  0x2e   :  { %p185_p6 = pnand %p184_p5, %p178_p2 }
  0x33   :  { %v126_v7 = vpop.eup %125 }
  0x34   :  { %v128_v8 = vpop.eup %127  ;;  %v69_v9 = vadd.f32 1.0, %v126_v7 }
  0x35   :  { %v70_v10 = vadd.f32 1.0, %v128_v8 }
  0x36   :  { %129 = vrcp.f32 %v69_v9 }
  0x37   :  { %131 = vrcp.f32 %v70_v10 }
  0x40   :  { %v130_v11 = vpop.eup %129 }
  0x41   :  { %v132_v12 = vpop.eup %131  ;;  %v76_v13 = vmul.f32 %v130_v11, %v61_v2 }
  0x42   :  { %v77_v14 = vmul.f32 %v132_v12, %v62_v3  ;;  %v82_v15 = vadd.f32 %v132_v12, %v130_v11 }
  0x44   :  { %v78_v16 = vadd.f32 %v77_v14, %v76_v13  ;;  %96 = vst [vmem:[#allocation10 + $0x8] sm:$0xff] %v82_v15 }
  0x46   :  { %93 = vst [vmem:[#allocation10] sm:$0xff] %v78_v16 }
  0x47   :  { %188 = shalt.err (!%p185_p6)
}
  0x48   :  { %s189_s10 = scalar_lea.hbm %s272_s2, 384 }
  0x49   :  { %p190_p7 = scmp.ne.s32.totalorder %s272_s2, %s189_s10  ;;  %p193_p8 = scmp.lt.u32.totalorder %s189_s10, %s272_s2 }
  0x4b   :  { %p195_p9 = pnand %p193_p8, %p190_p7 }
  0x4d   :  { %198 = shalt.err (!%p195_p9)
}
  0x4e   :  { %111 = dma.vmem_to_hbm [thread:$0]  %s106_s6, 384, %s272_s2, [#allocation7], %s206_s19, %s206_s19, %s207_s20  }
  0x4f   :  { %203 = dma.done.wait [#allocation7], 384  }
  0x50   :  { %204 = vsyncadd [#allocation7], 4294966912 }
  0x51   :  { %115 = vsyncpa [#allocation6], 1 }
  0x52   :  { %116 = vsyncpa [#allocation9], 1 }
  0x53   :  { %117 = vsyncpa [#allocation7], 1 }

</bundles_post_ra>
